<compile_context>
chip_gen: v7x
topology: tpu7x:2x2x1
jax: 0.10.0
libtpu: 0.0.40
codegen_flags: <defaults>
</compile_context>

<pallas_src>
import functools

import jax
import jax.numpy as jnp
import numpy as np
from jax import lax
from jax.experimental import pallas as pl
from jax.experimental.pallas import tpu as pltpu

# ----- module constants (deterministic, from __init__) -----
_A = 1.2766
_B = 12.13208
_ALPHA = float(np.exp(np.float32(-1.0 / _B)))   # mirrors torch.exp on float32
_BETA = float(np.float32(_A / _B))

# Per-operand tile budget.  3 operands x 2 pipeline buffers x 1.5 MiB = 9 MiB,
# comfortably inside v5e's 16 MiB default scoped VMEM (v6e/v7x: 32 MiB).
_TILE_BYTES = int(1.5 * 1024 * 1024)


def _round_up(x, m):
    return ((x + m - 1) // m) * m


def _pick_tile_rows(n_rows, n_cols):
    """Row-tile size: multiple of 8, <= ~1.5 MiB, and >= 2 tiles for megacore."""
    cap = max(8, (_TILE_BYTES // (4 * max(n_cols, 1)) // 8) * 8)
    if n_rows < 16:
        return n_rows                       # full-extent block is always legal
    if n_rows >= 32:
        split = _round_up((n_rows + 3) // 4, 8)   # aim for ~4 row tiles
    else:
        split = _round_up((n_rows + 1) // 2, 8)   # at least 2 row tiles (v7x)
    return max(8, min(cap, split))


def _pick_t_block(T, tick_tile_bytes, max_unroll=32):
    """Largest divisor of T (<= max_unroll) giving ~512 KiB xs/ys DMA blocks."""
    target = 512 * 1024
    best = 1
    for d in range(1, T + 1):
        if d > max_unroll:
            break
        if T % d:
            continue
        if d > 1 and d * tick_tile_bytes > _TILE_BYTES:
            break
        best = d
        if d * tick_tile_bytes >= target:
            break
    return best


# --------------------------- single-step kernel ---------------------------

def _fma_kernel(x_ref, y_pre_ref, y_ref):
    # Pure VPU elementwise op; x tile may be (tile_m, 1) and broadcasts.
    y_ref[...] = (jnp.float32(_ALPHA) * y_pre_ref[...]
                  + jnp.float32(_BETA) * x_ref[...])


def _run_single_step(x, y_pre):
    n_rows, n_cols = y_pre.shape
    x_cols = x.shape[1]
    tile_rows = _pick_tile_rows(n_rows, n_cols)
    n = n_rows * n_cols
    cost = pl.CostEstimate(flops=2 * n, transcendentals=0,
                           bytes_accessed=4 * (n_rows * x_cols + 2 * n))
    return pl.pallas_call(
        _fma_kernel,
        out_shape=jax.ShapeDtypeStruct((n_rows, n_cols), jnp.float32),
        grid=(pl.cdiv(n_rows, tile_rows),),
        in_specs=[
            pl.BlockSpec((tile_rows, x_cols), lambda i: (i, 0)),
            pl.BlockSpec((tile_rows, n_cols), lambda i: (i, 0)),
        ],
        out_specs=pl.BlockSpec((tile_rows, n_cols), lambda i: (i, 0)),
        compiler_params=pltpu.CompilerParams(
            dimension_semantics=("parallel",)),
        cost_estimate=cost,
    )(x, y_pre)


def motor_delay_forward(x, y_pre):
    """One step: y = alpha * y_pre + beta * x.  Returns y (the new state)."""
    if x.ndim == 1:
        x = x.reshape(x.shape[0], 1)         # mirrors torch's x.unsqueeze(1)
    x = x.astype(jnp.float32)
    y_pre = y_pre.astype(jnp.float32)

    n_env, n_act = y_pre.shape
    assert x.shape[0] == n_env and x.shape[1] in (1, n_act), (
        f"x shape {x.shape} does not broadcast against state {y_pre.shape}")

    if x.shape == y_pre.shape:
        # Lane-dense path: flatten to (rows, 128) (free row-major reshape);
        # pad by <512 B when total is not a multiple of 128 so every vreg is
        # full and every store is an unmasked full-lane vst.
        total = n_env * n_act
        pad = (-total) % 128
        xf = x.reshape(total)
        sf = y_pre.reshape(total)
        if pad:
            xf = jnp.pad(xf, (0, pad))
            sf = jnp.pad(sf, (0, pad))
        rows = (total + pad) // 128
        y = _run_single_step(xf.reshape(rows, 128), sf.reshape(rows, 128))
        if pad:
            y = y.reshape(rows * 128)[:total]
        return y.reshape(n_env, n_act)

    # Narrow-x path: x is (n_env, 1); broadcast over the action axis inside
    # the kernel (no materialized copy).  State stays in the module's natural
    # (n_env, n_act) layout so full-x steps and reset() remain cheap.
    return _run_single_step(x, y_pre)


# --------------------------- fused multi-step kernel ---------------------------

def _rollout_kernel(x_ref, y_pre_ref, ys_ref, y_carry, *, t_blk):
    tb = pl.program_id(1)

    @pl.when(tb == 0)
    def _():
        y_carry[...] = y_pre_ref[...]        # load persistent state once per tile

    def tick(t, y):
        y = jnp.float32(_ALPHA) * y + jnp.float32(_BETA) * x_ref[t]
        ys_ref[t] = y
        return y

    # Carry y in registers across the unrolled time block; touch the VMEM
    # scratch only once per block (halves store traffic in the hot loop).
    y_last = lax.fori_loop(0, t_blk, tick, y_carry[...], unroll=True)
    y_carry[...] = y_last


def motor_delay_rollout(xs, y_pre):
    """Run T consecutive ticks in one pallas_call.  xs: (T, n_env, n_act)."""
    xs = xs.astype(jnp.float32)
    y_pre = y_pre.astype(jnp.float32)
    T, n_env, n_act = xs.shape
    assert y_pre.shape == (n_env, n_act)

    total = n_env * n_act
    if total % 128 == 0:
        # Lane-dense slab view (free contiguous reshape).
        rows, cols = total // 128, 128
        xs_v = xs.reshape(T, rows, cols)
        st_v = y_pre.reshape(rows, cols)
    else:
        rows, cols = n_env, n_act
        xs_v, st_v = xs, y_pre

    tile_rows = _pick_tile_rows(rows, cols)
    tick_tile_bytes = tile_rows * cols * 4
    t_blk = _pick_t_block(T, tick_tile_bytes)

    cost = pl.CostEstimate(flops=2 * T * total, transcendentals=0,
                           bytes_accessed=4 * (2 * T * total + total))

    ys = pl.pallas_call(
        functools.partial(_rollout_kernel, t_blk=t_blk),
        out_shape=jax.ShapeDtypeStruct((T, rows, cols), jnp.float32),
        grid=(pl.cdiv(rows, tile_rows), pl.cdiv(T, t_blk)),  # time axis last (carry)
        in_specs=[
            pl.BlockSpec((t_blk, tile_rows, cols), lambda i, tb: (tb, i, 0)),
            pl.BlockSpec((tile_rows, cols), lambda i, tb: (i, 0)),
        ],
        out_specs=pl.BlockSpec((t_blk, tile_rows, cols), lambda i, tb: (tb, i, 0)),
        scratch_shapes=[pltpu.VMEM((tile_rows, cols), jnp.float32)],
        compiler_params=pltpu.CompilerParams(
            dimension_semantics=("parallel", "arbitrary")),
        cost_estimate=cost,
    )(xs_v, st_v)
    return ys.reshape(T, n_env, n_act)


_forward_jit = jax.jit(motor_delay_forward)
_rollout_jit = jax.jit(motor_delay_rollout)


class MotorDelay80:
    """JAX/Pallas port of MotorDelay_80 (stateful first-order motor delay)."""

    def __init__(self, num_envs, num_actions):
        self.num_envs = num_envs
        self.num_actions = num_actions
        self.y_pre = jnp.zeros((num_envs, num_actions), dtype=jnp.float32)

    def forward(self, x):
        y = _forward_jit(x, self.y_pre)
        self.y_pre = y
        return y

    __call__ = forward

    def rollout(self, xs):
        """Fused T-step update; returns the trajectory (T, envs, actions)."""
        ys = _rollout_jit(xs, self.y_pre)
        self.y_pre = ys[-1]
        return ys

    def reset(self, env_idx):
        self.y_pre = self.y_pre.at[env_idx].set(0.0)


# --------------------------- reference & tests ---------------------------

def _reference_forward(x, y_pre):
    if x.ndim == 1:
        x = x.reshape(x.shape[0], 1)
    return jnp.float32(_ALPHA) * y_pre + jnp.float32(_BETA) * x


if __name__ == "__main__":
    key = jax.random.PRNGKey(0)
    k1, k2, k3, k4, k5, k6 = jax.random.split(key, 6)

    # --- Test 1: (8, 12) state, full-shape x (padded lane-dense path), 2 steps ---
    mod = MotorDelay80(8, 12)
    x1 = jax.random.normal(k1, (8, 12), dtype=jnp.float32)
    x2 = jax.random.normal(k2, (8, 12), dtype=jnp.float32)
    y1 = jax.block_until_ready(mod.forward(x1))
    ref_y1 = _reference_forward(x1, jnp.zeros((8, 12), jnp.float32))
    assert jnp.allclose(y1, ref_y1, atol=1e-6), "step-1 mismatch"
    y2 = jax.block_until_ready(mod.forward(x2))
    ref_y2 = _reference_forward(x2, ref_y1)
    assert jnp.allclose(y2, ref_y2, atol=1e-6), "step-2 mismatch"

    # --- Test 2: 1-D x broadcast against a (16, 12) state (narrow-x path) ---
    mod_b = MotorDelay80(16, 12)
    xb = jax.random.normal(k3, (16,), dtype=jnp.float32)
    yb = jax.block_until_ready(mod_b.forward(xb))
    ref_yb = _reference_forward(xb, jnp.zeros((16, 12), jnp.float32))
    assert jnp.allclose(yb, ref_yb, atol=1e-6), "broadcast-x mismatch"

    # --- Test 3: exact lane-dense path ((64, 16) state viewed as (8, 128)) ---
    mod_l = MotorDelay80(64, 16)
    xl = jax.random.normal(k4, (64, 16), dtype=jnp.float32)
    yl = jax.block_until_ready(mod_l.forward(xl))
    ref_yl = _reference_forward(xl, jnp.zeros((64, 16), jnp.float32))
    assert jnp.allclose(yl, ref_yl, atol=1e-6), "lane-dense mismatch"

    # --- Test 4: fused rollout, natural layout (T=6, 8x12) ---
    T = 6
    mod_r = MotorDelay80(8, 12)
    xs = jax.random.normal(k5, (T, 8, 12), dtype=jnp.float32)
    ys = jax.block_until_ready(mod_r.rollout(xs))
    y_ref = jnp.zeros((8, 12), jnp.float32)
    for t in range(T):
        y_ref = _reference_forward(xs[t], y_ref)
        assert jnp.allclose(ys[t], y_ref, atol=1e-5), f"rollout step {t} mismatch"
    assert jnp.allclose(mod_r.y_pre, y_ref, atol=1e-5), "rollout state mismatch"

    # --- Test 5: fused rollout, lane-dense layout (T=4, 64x16 -> (4, 8, 128)) ---
    T2 = 4
    mod_r2 = MotorDelay80(64, 16)
    xs2 = jax.random.normal(k6, (T2, 64, 16), dtype=jnp.float32)
    ys2 = jax.block_until_ready(mod_r2.rollout(xs2))
    y_ref2 = jnp.zeros((64, 16), jnp.float32)
    for t in range(T2):
        y_ref2 = _reference_forward(xs2[t], y_ref2)
        assert jnp.allclose(ys2[t], y_ref2, atol=1e-5), f"dense rollout step {t} mismatch"
    assert jnp.allclose(mod_r2.y_pre, y_ref2, atol=1e-5), "dense rollout state mismatch"

    print("KERNEL_OK")
</pallas_src>

<mosaic_0001>
module attributes {stable_mosaic.version = 11 : i64} {
  func.func @_fma_kernel(%arg0: i32, %arg1: memref<1x128xf32, #tpu.memory_space<vmem>>, %arg2: memref<1x128xf32, #tpu.memory_space<vmem>>, %arg3: memref<1x128xf32, #tpu.memory_space<vmem>>) attributes {dimension_semantics = [#tpu.dimension_semantics<parallel>], iteration_bounds = array<i64: 1>, scalar_prefetch = 0 : i64, scratch_operands = 0 : i64, tpu.core_type = #tpu.core_type<tc>, window_params = [{transform_indices = @transform_0, window_bounds = array<i64: 1, 128>}, {transform_indices = @transform_1, window_bounds = array<i64: 1, 128>}, {transform_indices = @transform_2, window_bounds = array<i64: 1, 128>}]} {
    %c0 = arith.constant 0 : index
    %c0_0 = arith.constant 0 : index
    %0 = vector.load %arg2[%c0, %c0_0] : memref<1x128xf32, #tpu.memory_space<vmem>>, vector<1x128xf32>
    %cst = arith.constant 0.920879483 : f32
    %1 = vector.broadcast %cst : f32 to vector<1x128xf32>
    %2 = arith.mulf %1, %0 : vector<1x128xf32>
    %c0_1 = arith.constant 0 : index
    %c0_2 = arith.constant 0 : index
    %3 = vector.load %arg1[%c0_1, %c0_2] : memref<1x128xf32, #tpu.memory_space<vmem>>, vector<1x128xf32>
    %cst_3 = arith.constant 0.105225153 : f32
    %4 = vector.broadcast %cst_3 : f32 to vector<1x128xf32>
    %5 = arith.mulf %4, %3 : vector<1x128xf32>
    %6 = arith.addf %2, %5 : vector<1x128xf32>
    %c0_4 = arith.constant 0 : index
    %c0_5 = arith.constant 0 : index
    %7 = vector.load %arg3[%c0_4, %c0_5] : memref<1x128xf32, #tpu.memory_space<vmem>>, vector<1x128xf32>
    tpu.vector_store %arg3[%c0_4, %c0_5], %6 {strides = array<i32>} : memref<1x128xf32, #tpu.memory_space<vmem>>, vector<1x128xf32>,
    return
  }
  func.func @transform_0(%arg0: i32) -> (i32, i32) {
    %c0_i32 = arith.constant 0 : i32
    %c0_i32_0 = arith.constant 0 : i32
    return %arg0, %c0_i32 : i32, i32
  }
  func.func @transform_1(%arg0: i32) -> (i32, i32) {
    %c0_i32 = arith.constant 0 : i32
    %c0_i32_0 = arith.constant 0 : i32
    return %arg0, %c0_i32 : i32, i32
  }
  func.func @transform_2(%arg0: i32) -> (i32, i32) {
    %c0_i32 = arith.constant 0 : i32
    %c0_i32_0 = arith.constant 0 : i32
    return %arg0, %c0_i32 : i32, i32
  }
}

</mosaic_0001>

<bundles_post_ra>
// kernel: motor_delay_forward.1
= control target key start
LH: loop header
LB: loop body
LE: loop exit
PB: predicated region body
PF: predicated region fallthrough
CT: control target
= control target key end

     0   :  { %s45_s0 = inlined_call_operand.vmem [shape: f32[1,128], index: 0, kind: input, shape index: {}]   ;;  %s46_s1 = inlined_call_operand.vmem [shape: f32[1,128], index: 1, kind: input, shape index: {}]   ;;  %s47_s2 = inlined_call_operand.vmem [shape: f32[1,128], index: 2, kind: output, shape index: {}]  }
   0x1   :  { %v11_v0 = vld [vmem:[%s46_s1] sm:$0x1] }
   0x2   :  { %v13_v1 = vld [vmem:[%s45_s0] sm:$0x1]  ;;  %v12_v2 = vmul.f32 0.9208795, %v11_v0 }
   0x3   :  { %v14_v3 = vmul.f32 0.10522515, %v13_v1 }
   0x5   :  { %v15_v4 = vadd.f32 %v14_v3, %v12_v2 }
   0x7   :  { %16 = vst [vmem:[%s47_s2] sm:$0x1] %v15_v4 }

</bundles_post_ra>
